<compile_context>
chip_gen: v7x
topology: tpu7x:2x2x1
jax: 0.10.0
libtpu: 0.0.40
codegen_flags: <defaults>
</compile_context>

<pallas_src>
import numpy as np
import jax
import jax.numpy as jnp
from jax.experimental import pallas as pl
from jax.experimental.pallas import tpu as pltpu


def _round_up(x, m):
    return ((x + m - 1) // m) * m


# ----------------------------------------------------------------------------
# Pallas kernel: per-row scale of a lane-dense (tm, tn) tile.
#   x_ref : (tm, tn)  rows are flattened (b, c) pairs, lanes are spatial.
#   s_ref : (tm, 1)   per-row (== per-channel, per-image) implicit multiplier.
# ----------------------------------------------------------------------------
def _implicit_mul_kernel(x_ref, s_ref, o_ref):
    o_ref[...] = x_ref[...] * s_ref[...]   # lane-broadcast multiply on the VPU


def _pick_tiles(M, N, itemsize):
    """Tile sizes: dtype-native sublane x 128-lane aligned (or the full dim),
    sized so 2x double-buffered (in + out) tiles fit every generation."""
    sublane = {4: 8, 2: 16, 1: 32}.get(itemsize, 8)

    # ~4 MiB f32 (2 MiB bf16) tiles: DMA per step >> ~0.35 us fixed overhead
    # even at v7x's 3.2 TB/s; total buffering ~16 MiB f32 -> fits v5e/v6e/v7x.
    tm_target, tn_target = 512, 2048

    tm = M if M <= tm_target else _round_up(tm_target, sublane)
    tn = N if N <= tn_target else _round_up(tn_target, 128)

    # v7x has 2 TensorCores: make sure at least one "parallel" axis has >1
    # grid step for small layers (harmless on v5e/v6e).
    if pl.cdiv(M, tm) * pl.cdiv(N, tn) < 2:
        if N >= 256:
            tn = _round_up(pl.cdiv(N, 2), 128)
        elif M >= 2 * sublane:
            tm = _round_up(pl.cdiv(M, 2), sublane)
    return tm, tn


def _pallas_scale_rows(x2, s2, *, tm, tn, donate=False):
    M, N = x2.shape
    itemsize = jnp.dtype(x2.dtype).itemsize
    grid = (pl.cdiv(M, tm), pl.cdiv(N, tn))   # ragged edges handled by Pallas

    extra = {}
    if donate:
        # Only when the caller donates x: halves the HBM working set.
        extra["input_output_aliases"] = {0: 0}

    return pl.pallas_call(
        _implicit_mul_kernel,
        out_shape=jax.ShapeDtypeStruct((M, N), x2.dtype),
        grid_spec=pltpu.PrefetchScalarGridSpec(
            num_scalar_prefetch=0,
            grid=grid,
            in_specs=[
                pl.BlockSpec((tm, tn), lambda i, j: (i, j)),  # x tile
                # Per-row scale: block index constant over innermost j axis,
                # so its DMA is elided across the lane sweep.
                pl.BlockSpec((tm, 1), lambda i, j: (i, 0)),
            ],
            out_specs=pl.BlockSpec((tm, tn), lambda i, j: (i, j)),
        ),
        compiler_params=pltpu.CompilerParams(
            dimension_semantics=("parallel", "parallel"),
            vmem_limit_bytes=40 << 20,   # > buffering need, < v7x 64 MiB VMEM
        ),
        cost_estimate=pl.CostEstimate(
            flops=M * N,
            transcendentals=0,
            bytes_accessed=2 * M * N * itemsize + M * itemsize),
        **extra,
    )(x2, s2)


# ----------------------------------------------------------------------------
# ImplicitM forward
# ----------------------------------------------------------------------------
@jax.jit
def implicit_m(x, implicit):
    """y = implicit * x ;  x: (B, C, H, W), implicit: (1, C, 1, 1)."""
    B, C, H, W = x.shape
    M, N = B * C, H * W

    # Lane-dense view: rows = (b, c) pairs, lanes = flattened spatial dim.
    # Contiguous reshape -> no copy.
    x2 = x.reshape(M, N)
    # Tiny (M, 1) per-row scale (KiB-scale); cast to the activation dtype
    # (matches PyTorch when param/input share dtype; ~1.0+-0.02 so bf16
    # quantization of the scale is negligible otherwise).
    s2 = jnp.broadcast_to(implicit.reshape(1, C), (B, C)).reshape(M, 1)
    s2 = s2.astype(x.dtype)

    tm, tn = _pick_tiles(M, N, jnp.dtype(x.dtype).itemsize)
    y2 = _pallas_scale_rows(x2, s2, tm=tm, tn=tn)
    return y2.reshape(B, C, H, W)


# ----------------------------------------------------------------------------
if __name__ == "__main__":
    key = jax.random.PRNGKey(0)
    k_x, k_w = jax.random.split(key)

    B, C, H, W = 2, 4, 16, 16
    x = jax.random.normal(k_x, (B, C, H, W), jnp.float32)
    # nn.Parameter(torch.ones(1, C, 1, 1)) followed by normal_(mean=1.0, std=0.02)
    implicit = 1.0 + 0.02 * jax.random.normal(k_w, (1, C, 1, 1), jnp.float32)

    y = implicit_m(x, implicit)
    y = jax.block_until_ready(y)

    # Pure-JAX reference (exact forward semantics of the PyTorch module).
    ref = implicit * x
    np.testing.assert_allclose(np.asarray(y), np.asarray(ref),
                               rtol=1e-6, atol=1e-6)
    print("KERNEL_OK")
</pallas_src>

<mosaic_0001>
module attributes {stable_mosaic.version = 11 : i64} {
  func.func @_implicit_mul_kernel(%arg0: i32, %arg1: i32, %arg2: memref<8x128xf32, #tpu.memory_space<vmem>>, %arg3: memref<8x1xf32, #tpu.memory_space<vmem>>, %arg4: memref<8x128xf32, #tpu.memory_space<vmem>>) attributes {dimension_semantics = [#tpu.dimension_semantics<parallel>, #tpu.dimension_semantics<parallel>], iteration_bounds = array<i64: 1, 2>, scalar_prefetch = 0 : i64, scratch_operands = 0 : i64, tpu.core_type = #tpu.core_type<tc>, window_params = [{transform_indices = @transform_0, window_bounds = array<i64: 8, 128>}, {transform_indices = @transform_1, window_bounds = array<i64: 8, 1>}, {transform_indices = @transform_2, window_bounds = array<i64: 8, 128>}]} {
    %c0 = arith.constant 0 : index
    %c0_0 = arith.constant 0 : index
    %0 = vector.load %arg2[%c0, %c0_0] : memref<8x128xf32, #tpu.memory_space<vmem>>, vector<8x128xf32>
    %c0_1 = arith.constant 0 : index
    %c0_2 = arith.constant 0 : index
    %1 = vector.load %arg3[%c0_1, %c0_2] : memref<8x1xf32, #tpu.memory_space<vmem>>, vector<8x1xf32>
    %2 = vector.broadcast %1 : vector<8x1xf32> to vector<8x128xf32>
    %3 = arith.mulf %0, %2 : vector<8x128xf32>
    %c0_3 = arith.constant 0 : index
    %c0_4 = arith.constant 0 : index
    %4 = vector.load %arg4[%c0_3, %c0_4] : memref<8x128xf32, #tpu.memory_space<vmem>>, vector<8x128xf32>
    tpu.vector_store %arg4[%c0_3, %c0_4], %3 {strides = array<i32>} : memref<8x128xf32, #tpu.memory_space<vmem>>, vector<8x128xf32>,
    return
  }
  func.func @transform_0(%arg0: i32, %arg1: i32) -> (i32, i32) {
    %c0_i32 = arith.constant 0 : i32
    return %arg0, %arg1 : i32, i32
  }
  func.func @transform_1(%arg0: i32, %arg1: i32) -> (i32, i32) {
    %c0_i32 = arith.constant 0 : i32
    %c0_i32_0 = arith.constant 0 : i32
    return %arg0, %c0_i32 : i32, i32
  }
  func.func @transform_2(%arg0: i32, %arg1: i32) -> (i32, i32) {
    %c0_i32 = arith.constant 0 : i32
    return %arg0, %arg1 : i32, i32
  }
}

</mosaic_0001>

<bundles_post_ra>
// kernel: implicit_m.1
= control target key start
LH: loop header
LB: loop body
LE: loop exit
PB: predicated region body
PF: predicated region fallthrough
CT: control target
= control target key end

     0   :  { %s376_s9 = smov 0   ;;  %s378_s10 = smov 0   ;;  %s400_s0 = inlined_call_operand.vmem [shape: f32[8,256], index: 0, kind: input, shape index: {}]   ;;  %s401_s1 = inlined_call_operand.vmem [shape: f32[8,1], index: 1, kind: input, shape index: {}]   ;;  %s402_s2 = inlined_call_operand.vmem [shape: f32[8,256], index: 2, kind: output, shape index: {}]  }
   0x1   :  { %s380_s11 = smov 0  }
   0x2 LB: > { %s21_s12 = sadd.s32 1, %s354_s10  ;;  %p305_p0 = scmp.ge.s32.totalorder %s358_s11, 1  ;;  %s358_s11 = sphi %s380_s11, %s12_s11   ;;  %s354_s10 = sphi %s378_s10, %s404_s10   ;;  %s350_s9 = sphi %s376_s9, %s403_s9  }
   0x3   : > { %p22_p1 = scmp.ge.s32.totalorder %s21_s12, 2  ;;  %p140_p2 = scmp.lt.s32.totalorder %s358_s11, 3 }
   0x5   : > { %s406_s12 = smov (%p22_p1, %s21_s12), 0  ;;  %p141_p3 = pnand %p305_p0, %p140_p2 }
   0x6   : > { %v193_v0 = vld [vmem:[%s401_s1] sm:$0xff] (!%p141_p3)  ;;  %v360_v1 = vmov (!%p141_p3), 0   ;;  %p174_p4 = scmp.lt.s32.totalorder (!%p141_p3), %s350_s9, 1 }
   0x7   : > { %144 = sbr.rel (%p141_p3) target bundleno = 139 (0x8b), region = 28  ;;  %335 = vset.pattern.permute.xlu0 (!%p141_p3), %v360_v1 }
   0x8   : > { %196 = vperm.xlu0 (!%p141_p3), %335, %v193_v0  }
   0xe   : > { %s408_s9 = smov (!%p174_p4, %s350_s9), 1 }
   0xf   : > { %s306_s15 = sshll.u32 %s408_s9, 3 }
  0x10   : > { %s179_s18 = scalar_lea.vmem %s400_s0, %s306_s15  ;;  %s191_s21 = scalar_lea.vmem %s402_s2, %s306_s15 }
  0x11   : > { %v192_v2 = vld [vmem:[%s179_s18] sm:$0xff] }
  0x87   : > { %v197_v3 = vpop.permute.xlu0 %196 }
  0x88   : > { %v199_v4 = vmul.f32 %v197_v3, %v192_v2 }
  0x8a   : > { %200 = vst [vmem:[%s191_s21] sm:$0xff] %v199_v4 }
  0x8b PF: > { %s12_s11 = sadd.s32 1, %s358_s11   ;;  %s403_s9 = smov %s354_s10 }
  0x8c   : > { %p9_p5 = scmp.ge.s32.totalorder %s12_s11, 4   ;;  %s404_s10 = smov %s406_s12 }
  0x8e   :  { %11 = sbr.rel (!%p9_p5) target bundleno = 2 (0x2), region = 61 }

</bundles_post_ra>
